<compile_context>
chip_gen: v5e
topology: v5e:2x2
jax: 0.10.0
libtpu: 0.0.40
codegen_flags: <defaults>
</compile_context>

<pallas_src>
import functools

import jax
import jax.numpy as jnp
from jax import lax
from jax.experimental import pallas as pl
from jax.experimental.pallas import tpu as pltpu


def _mlp_kernel(x_ref, w_ref, b_ref, o_ref):
    # x_ref: (C, t_hw)  native-layout activation tile (channels on sublanes,
    #                   spatial positions on lanes) -> transpose is fused here.
    # w_ref: (C, N)     full weight, K-major.
    # b_ref: (1, N)     bias, f32.
    # o_ref: (t_hw, N)  output tile (tokens-major, matching (B, HW, N)).
    acc = lax.dot_general(
        x_ref[...], w_ref[...],
        dimension_numbers=(((0,), (0,)), ((), ())),   # contract the C axis
        preferred_element_type=jnp.float32,
    )                                                 # (t_hw, N), f32 accum
    o_ref[...] = (acc + b_ref[...]).astype(o_ref.dtype)


def _round_down_multiple(x, m):
    return (x // m) * m


def _pick_tile_hw(hw, c, n, in_bytes, out_bytes, t_req,
                  budget_bytes=20 * 1024 * 1024):
    """Largest 128-aligned HW tile whose (double-buffered) footprint fits the
    conservative VMEM budget (safe for v7x's 32 MiB default scoped VMEM)."""

    def footprint(t):
        # double-buffered input + output tiles, plus (conservatively counted
        # as double-buffered) weight and bias
        return (2 * c * t * in_bytes + 2 * t * n * out_bytes
                + 2 * c * n * in_bytes + 2 * n * 4)

    if hw <= 128:
        return hw                          # full extent is always legal
    t = max(128, _round_down_multiple(min(t_req, hw), 128))
    while t > 256 and footprint(t) > budget_bytes:
        t = max(256, _round_down_multiple(t // 2, 128))
    if t >= hw:
        t = hw                             # full extent along HW
    return t


@functools.partial(jax.jit, static_argnames=("t_hw",))
def mlp_forward(x_nchw, weight, bias, *, t_hw=2048):
    """x_nchw: (B, C, H, W); weight: (embed_dim, C); bias: (embed_dim,).

    Returns (B, H*W, embed_dim), same dtype as x_nchw.
    """
    B, C, H, W = x_nchw.shape
    N = weight.shape[0]
    HW = H * W

    # Free, layout-preserving view: (B, C, H, W) -> (B, C, HW).
    x3 = x_nchw.reshape(B, C, HW)
    # Tiny one-time casts (weight/bias are small): stream weight in the same
    # dtype as the activations; keep the bias add in f32 inside the kernel.
    w_t = weight.T.astype(x_nchw.dtype)          # (C, N)
    b2 = bias.astype(jnp.float32).reshape(1, N)  # (1, N)

    in_bytes = x_nchw.dtype.itemsize
    out_bytes = x_nchw.dtype.itemsize
    t = _pick_tile_hw(HW, C, N, in_bytes, out_bytes, t_hw)
    n_t = pl.cdiv(HW, t)

    cost = pl.CostEstimate(
        flops=2 * B * HW * C * N,
        transcendentals=0,
        bytes_accessed=(B * HW * C * in_bytes      # activations in
                        + C * N * in_bytes         # weight
                        + N * 4                    # bias
                        + B * HW * N * out_bytes), # output
    )

    out = pl.pallas_call(
        _mlp_kernel,
        out_shape=jax.ShapeDtypeStruct((B, HW, N), x_nchw.dtype),
        grid_spec=pltpu.PrefetchScalarGridSpec(
            num_scalar_prefetch=0,
            grid=(B, n_t),
            in_specs=[
                # native NCHW tile: (1 batch, all C, t spatial positions)
                pl.BlockSpec((None, C, t), lambda b, i: (b, 0, i)),
                # full weight / bias, resident across the whole grid
                pl.BlockSpec((C, N), lambda b, i: (0, 0)),
                pl.BlockSpec((1, N), lambda b, i: (0, 0)),
            ],
            out_specs=pl.BlockSpec((None, t, N), lambda b, i: (b, i, 0)),
        ),
        compiler_params=pltpu.CompilerParams(
            dimension_semantics=("parallel", "parallel")),
        cost_estimate=cost,
    )(x3, w_t, b2)

    return out


def init_linear_params(key, input_dim, embed_dim, dtype=jnp.float32):
    # Deterministic init matching nn.Linear's default: U(-1/sqrt(in), 1/sqrt(in))
    kw, kb = jax.random.split(key)
    bound = 1.0 / (input_dim ** 0.5)
    weight = jax.random.uniform(kw, (embed_dim, input_dim), dtype,
                                minval=-bound, maxval=bound)
    bias = jax.random.uniform(kb, (embed_dim,), dtype,
                              minval=-bound, maxval=bound)
    return weight, bias


if __name__ == "__main__":
    key = jax.random.PRNGKey(0)
    kx, kp = jax.random.split(key)

    # Small shapes consistent with the module: NCHW input, C = input_dim.
    B, C, H, W = 2, 32, 16, 16
    embed_dim = 64

    x = jax.random.normal(kx, (B, C, H, W), jnp.float32)
    weight, bias = init_linear_params(kp, input_dim=C, embed_dim=embed_dim)

    # f32 path
    out = jax.block_until_ready(mlp_forward(x, weight, bias))

    tokens_ref = jnp.transpose(x.reshape(B, C, H * W), (0, 2, 1))
    ref = tokens_ref @ weight.T + bias
    assert out.shape == (B, H * W, embed_dim), out.shape
    assert jnp.allclose(out, ref, atol=1e-4, rtol=1e-4), \
        float(jnp.max(jnp.abs(out - ref)))

    # bf16 streaming path (halves HBM bytes for the dominant tensors; the
    # accumulator and bias add remain f32 inside the kernel).
    x16 = x.astype(jnp.bfloat16)
    w16 = weight.astype(jnp.bfloat16)
    b16 = bias.astype(jnp.bfloat16)
    out16 = jax.block_until_ready(mlp_forward(x16, w16, b16))
    tokens16 = jnp.transpose(x16.reshape(B, C, H * W).astype(jnp.float32),
                             (0, 2, 1))
    ref16 = tokens16 @ w16.astype(jnp.float32).T + b16.astype(jnp.float32)
    assert out16.shape == (B, H * W, embed_dim)
    assert out16.dtype == jnp.bfloat16
    assert jnp.allclose(out16.astype(jnp.float32), ref16, atol=5e-2, rtol=5e-2), \
        float(jnp.max(jnp.abs(out16.astype(jnp.float32) - ref16)))

    print("KERNEL_OK")
</pallas_src>

<mosaic_0001>
module attributes {stable_mosaic.version = 11 : i64} {
  func.func @_mlp_kernel(%arg0: i32, %arg1: i32, %arg2: memref<1x32x256xf32, #tpu.memory_space<vmem>>, %arg3: memref<32x64xf32, #tpu.memory_space<vmem>>, %arg4: memref<1x64xf32, #tpu.memory_space<vmem>>, %arg5: memref<1x256x64xf32, #tpu.memory_space<vmem>>) attributes {dimension_semantics = [#tpu.dimension_semantics<parallel>, #tpu.dimension_semantics<parallel>], iteration_bounds = array<i64: 2, 1>, scalar_prefetch = 0 : i64, scratch_operands = 0 : i64, tpu.core_type = #tpu.core_type<tc>, window_params = [{transform_indices = @transform_0, window_bounds = array<i64: 1, 32, 256>}, {pipeline_mode = #tpu.pipeline_mode<synchronous>, transform_indices = @transform_1, window_bounds = array<i64: 32, 64>}, {pipeline_mode = #tpu.pipeline_mode<synchronous>, transform_indices = @transform_2, window_bounds = array<i64: 1, 64>}, {transform_indices = @transform_3, window_bounds = array<i64: 1, 256, 64>}]} {
    %c0 = arith.constant 0 : index
    %c0_0 = arith.constant 0 : index
    %c0_1 = arith.constant 0 : index
    %0 = vector.load %arg2[%c0, %c0_0, %c0_1] : memref<1x32x256xf32, #tpu.memory_space<vmem>>, vector<1x32x256xf32>
    %1 = vector.shape_cast %0 : vector<1x32x256xf32> to vector<32x256xf32>
    %c0_2 = arith.constant 0 : index
    %c0_3 = arith.constant 0 : index
    %2 = vector.load %arg3[%c0_2, %c0_3] : memref<32x64xf32, #tpu.memory_space<vmem>>, vector<32x64xf32>
    %cst = arith.constant dense<0.000000e+00> : vector<256x64xf32>
    %3 = tpu.matmul %1, %2, %cst {dimension_numbers = #tpu.dot_dimension_numbers<[0], [0], [1], [1], [0, 1, 1, 1], [], []>} : vector<32x256xf32>, vector<32x64xf32>, vector<256x64xf32> -> vector<256x64xf32>
    %c0_4 = arith.constant 0 : index
    %c0_5 = arith.constant 0 : index
    %4 = vector.load %arg4[%c0_4, %c0_5] : memref<1x64xf32, #tpu.memory_space<vmem>>, vector<1x64xf32>
    %5 = vector.broadcast %4 : vector<1x64xf32> to vector<256x64xf32>
    %6 = arith.addf %3, %5 : vector<256x64xf32>
    %c0_6 = arith.constant 0 : index
    %c0_7 = arith.constant 0 : index
    %c0_8 = arith.constant 0 : index
    %7 = vector.load %arg5[%c0_6, %c0_7, %c0_8] : memref<1x256x64xf32, #tpu.memory_space<vmem>>, vector<1x256x64xf32>
    %8 = vector.shape_cast %7 : vector<1x256x64xf32> to vector<256x64xf32>
    %9 = vector.shape_cast %6 : vector<256x64xf32> to vector<1x256x64xf32>
    tpu.vector_store %arg5[%c0_6, %c0_7, %c0_8], %9 {strides = array<i32>} : memref<1x256x64xf32, #tpu.memory_space<vmem>>, vector<1x256x64xf32>,
    return
  }
  func.func @transform_0(%arg0: i32, %arg1: i32) -> (i32, i32, i32) {
    %c0_i32 = arith.constant 0 : i32
    %c0_i32_0 = arith.constant 0 : i32
    return %arg0, %c0_i32, %arg1 : i32, i32, i32
  }
  func.func @transform_1(%arg0: i32, %arg1: i32) -> (i32, i32) {
    %c0_i32 = arith.constant 0 : i32
    %c0_i32_0 = arith.constant 0 : i32
    %c0_i32_1 = arith.constant 0 : i32
    return %c0_i32, %c0_i32_0 : i32, i32
  }
  func.func @transform_2(%arg0: i32, %arg1: i32) -> (i32, i32) {
    %c0_i32 = arith.constant 0 : i32
    %c0_i32_0 = arith.constant 0 : i32
    %c0_i32_1 = arith.constant 0 : i32
    return %c0_i32, %c0_i32_0 : i32, i32
  }
  func.func @transform_3(%arg0: i32, %arg1: i32) -> (i32, i32, i32) {
    %c0_i32 = arith.constant 0 : i32
    %c0_i32_0 = arith.constant 0 : i32
    return %arg0, %arg1, %c0_i32 : i32, i32, i32
  }
}

</mosaic_0001>

<bundles_post_ra>
// kernel: mlp_forward.1
= control target key start
LH: loop header
LB: loop body
LE: loop exit
PB: predicated region body
PF: predicated region fallthrough
CT: control target
= control target key end

     0   :  { %s747_s12 = smov 0   ;;  %s749_s13 = smov 0   ;;  %s931_s0 = inlined_call_operand.vmem [shape: f32[2,32,256], index: 0, kind: input, shape index: {}]   ;;  %s932_s1 = inlined_call_operand.vmem [shape: f32[32,64], index: 1, kind: input, shape index: {}]   ;;  %s933_s2 = inlined_call_operand.vmem [shape: f32[1,64], index: 2, kind: input, shape index: {}]   ;;  %s934_s3 = inlined_call_operand.vmem [shape: f32[2,256,64], index: 3, kind: output, shape index: {}]  }
   0x1   :  { %s751_s14 = smov 0  }
   0x2 LB: > { %s25_s15 = sadd.s32 1, %s721_s13  ;;  %p624_p0 = scmp.ge.s32.totalorder %s725_s14, 1  ;;  %s725_s14 = sphi %s751_s14, %s13_s14   ;;  %s721_s13 = sphi %s749_s13, %s936_s13   ;;  %s717_s12 = sphi %s747_s12, %s935_s12  }
   0x3   : > { %p27_p1 = scmp.ge.s32.totalorder %s25_s15, 2  ;;  %p158_p2 = scmp.lt.s32.totalorder %s725_s14, 3 }
   0x5   : > { %s938_s15 = smov (%p27_p1, %s25_s15), 0  ;;  %p159_p3 = pnand %p624_p0, %p158_p2 }
   0x6   : > { %p191_p4 = scmp.lt.s32.totalorder (!%p159_p3), %s717_s12, 1 }
   0x7   : > { %162 = sbr.rel (%p159_p3) target bundleno = 439 (0x1b7), region = 32 }
   0xc   : > { %v221_v0 = vld [vmem:[%s932_s1 + $0x18] sm:$0xff]  ;;  %v220_v1 = vld [vmem:[%s932_s1 + $0x10] sm:$0xff]  ;;  %s940_s12 = smov (!%p191_p4, %s717_s12), 1  ;;  %v219_v2 = vld [vmem:[%s932_s1 + $0x8] sm:$0xff]  ;;  %vm290_vm0 = vcmask 261120   ;;  %vm500_vm1 = vcmask 523264  }
   0xd   : > { %666 = vmatpush.msra.mxu2 %v221_v0  ;;  %399 = vmatpush.msra.mxu0 %v221_v0  ;;  %s663_s22 = sshll.u32 %s940_s12, 6  ;;  %v218_v3 = vld [vmem:[%s932_s1] sm:$0xff]  ;;  %s664_s28 = sshll.u32 %s940_s12, 8 }
   0xe   : > { %667 = vmatpush.msra.mxu3 %v221_v0  ;;  %665 = vmatpush.msra.mxu1 %v221_v0  ;;  %s198_s25 = scalar_lea.vmem %s931_s0, %s663_s22  ;;  %v819_v44 = vld [vmem:[%s933_s2] ss:$0 sm:$0xff]  ;;  %s824_s6 = scalar_lea.vmem %s934_s3, %s664_s28 }
   0xf   : > { %669 = vmatpush.msra.mxu2 %v220_v1  ;;  %400 = vmatpush.msra.mxu0 %v220_v1  ;;  %v211_v4 = vld [vmem:[%s198_s25 + $0x8] sm:$0xff]  ;;  %v210_v5 = vld [vmem:[%s198_s25] sm:$0xff]  ;;  %v213_v6 = vld [vmem:[%s198_s25 + $0x18] sm:$0xff] }
  0x10   : > { %670 = vmatpush.msra.mxu3 %v220_v1  ;;  %668 = vmatpush.msra.mxu1 %v220_v1  ;;  %v212_v7 = vld [vmem:[%s198_s25 + $0x10] sm:$0xff]  ;;  %v215_v8 = vld [vmem:[%s198_s25 + $0x28] sm:$0xff]  ;;  %v214_v9 = vld [vmem:[%s198_s25 + $0x20] sm:$0xff] }
  0x11   : > { %672 = vmatpush.msra.mxu2 %v219_v2  ;;  %401 = vmatpush.msra.mxu0 %v219_v2  ;;  %v217_v10 = vld [vmem:[%s198_s25 + $0x38] sm:$0xff]  ;;  %v216_v11 = vld [vmem:[%s198_s25 + $0x30] sm:$0xff] }
  0x12   : > { %673 = vmatpush.msra.mxu3 %v219_v2  ;;  %671 = vmatpush.msra.mxu1 %v219_v2 }
  0x13   : > { %258 = vxpose.xlu0.b32.start [1/4] (short) %v211_v4, 128  ;;  %226 = vxpose.xlu1.b32.start [1/4] (short) %v210_v5, 128 }
  0x14   : > { %675 = vmatpush.msra.mxu2 %v218_v3  ;;  %402 = vmatpush.msra.mxu0 %v218_v3 }
  0x15   : > { %676 = vmatpush.msra.mxu3 %v218_v3  ;;  %674 = vmatpush.msra.mxu1 %v218_v3 }
  0x1b   : > { %259 = vxpose.xlu0.b32.cont [2/4] (short) %v213_v6, 128  ;;  %227 = vxpose.xlu1.b32.cont [2/4] (short) %v212_v7, 128 }
  0x23   : > { %260 = vxpose.xlu0.b32.cont [3/4] (short) %v215_v8, 128  ;;  %228 = vxpose.xlu1.b32.cont [3/4] (short) %v214_v9, 128 }
  0x2b   : > { %261 = vxpose.xlu0.b32.end [4/4] (short) %v217_v10, 128  ;;  %229 = vxpose.xlu1.b32.end [4/4] (short) %v216_v11, 128 }
  0xb7   : > { %v274_v12 = vpop.trf.xlu0  ;;  %v242_v13 = vpop.trf.xlu1 }
  0xb8   : > { %645 = vmatmul.msk.f32.vlgmr.msra.gmra.mxu2 %vm290_vm0, %v274_v12  ;;  %629 = vmatmul.msk.f32.vlgmr.msra.gmra.mxu0 %vm290_vm0, %v242_v13 }
  0xbf   : > { %v275_v14 = vpop.trf.xlu0  ;;  %v243_v15 = vpop.trf.xlu1 }
  0xc0   : > { %646 = vmatmul.msk.f32.gmra.mxu2 %vm290_vm0, %v275_v14  ;;  %630 = vmatmul.msk.f32.gmra.mxu0 %vm290_vm0, %v243_v15 }
  0xc7   : > { %v276_v16 = vpop.trf.xlu0  ;;  %v244_v17 = vpop.trf.xlu1 }
  0xc8   : > { %647 = vmatmul.msk.f32.gmra.mxu2 %vm290_vm0, %v276_v16  ;;  %631 = vmatmul.msk.f32.gmra.mxu0 %vm290_vm0, %v244_v17 }
  0xcf   : > { %v277_v18 = vpop.trf.xlu0  ;;  %v245_v19 = vpop.trf.xlu1 }
  0xd0   : > { %648 = vmatmul.msk.f32.gmra.mxu2 %vm290_vm0, %v277_v18  ;;  %632 = vmatmul.msk.f32.gmra.mxu0 %vm290_vm0, %v245_v19 }
  0xd7   : > { %v278_v20 = vpop.trf.xlu0  ;;  %v246_v21 = vpop.trf.xlu1 }
  0xd8   : > { %649 = vmatmul.msk.f32.gmra.mxu2 %vm290_vm0, %v278_v20  ;;  %633 = vmatmul.msk.f32.gmra.mxu0 %vm290_vm0, %v246_v21 }
  0xdf   : > { %v279_v22 = vpop.trf.xlu0  ;;  %v247_v23 = vpop.trf.xlu1 }
  0xe0   : > { %650 = vmatmul.msk.f32.gmra.mxu2 %vm290_vm0, %v279_v22  ;;  %634 = vmatmul.msk.f32.gmra.mxu0 %vm290_vm0, %v247_v23 }
  0xe7   : > { %v280_v24 = vpop.trf.xlu0  ;;  %v248_v25 = vpop.trf.xlu1 }
  0xe8   : > { %651 = vmatmul.msk.f32.gmra.mxu2 %vm290_vm0, %v280_v24  ;;  %635 = vmatmul.msk.f32.gmra.mxu0 %vm290_vm0, %v248_v25 }
  0xef   : > { %v281_v26 = vpop.trf.xlu0  ;;  %v249_v27 = vpop.trf.xlu1 }
  0xf0   : > { %652 = vmatmul.msk.f32.gmra.mxu2 %vm290_vm0, %v281_v26  ;;  %636 = vmatmul.msk.f32.gmra.mxu0 %vm290_vm0, %v249_v27 }
  0xf7   : > { %v282_v28 = vpop.trf.xlu0  ;;  %v250_v29 = vpop.trf.xlu1 }
  0xf8   : > { %653 = vmatmul.msk.f32.vlgmr.msra.gmra.mxu3 %vm290_vm0, %v282_v28  ;;  %637 = vmatmul.msk.f32.vlgmr.msra.gmra.mxu1 %vm290_vm0, %v250_v29 }
  0xff   : > { %v283_v30 = vpop.trf.xlu0  ;;  %v251_v31 = vpop.trf.xlu1 }
 0x100   : > { %654 = vmatmul.msk.f32.gmra.mxu3 %vm290_vm0, %v283_v30  ;;  %638 = vmatmul.msk.f32.gmra.mxu1 %vm290_vm0, %v251_v31 }
 0x107   : > { %v284_v32 = vpop.trf.xlu0  ;;  %v252_v33 = vpop.trf.xlu1 }
 0x108   : > { %655 = vmatmul.msk.f32.gmra.mxu3 %vm290_vm0, %v284_v32  ;;  %639 = vmatmul.msk.f32.gmra.mxu1 %vm290_vm0, %v252_v33 }
 0x10f   : > { %v285_v34 = vpop.trf.xlu0  ;;  %v253_v35 = vpop.trf.xlu1 }
 0x110   : > { %656 = vmatmul.msk.f32.gmra.mxu3 %vm290_vm0, %v285_v34  ;;  %640 = vmatmul.msk.f32.gmra.mxu1 %vm290_vm0, %v253_v35 }
 0x117   : > { %v286_v36 = vpop.trf.xlu0  ;;  %v254_v37 = vpop.trf.xlu1 }
 0x118   : > { %657 = vmatmul.msk.f32.gmra.mxu3 %vm290_vm0, %v286_v36  ;;  %641 = vmatmul.msk.f32.gmra.mxu1 %vm290_vm0, %v254_v37 }
 0x11f   : > { %v287_v38 = vpop.trf.xlu0  ;;  %v255_v39 = vpop.trf.xlu1 }
 0x120   : > { %658 = vmatmul.msk.f32.gmra.mxu3 %vm290_vm0, %v287_v38  ;;  %642 = vmatmul.msk.f32.gmra.mxu1 %vm290_vm0, %v255_v39 }
 0x127   : > { %v288_v40 = vpop.trf.xlu0  ;;  %v256_v41 = vpop.trf.xlu1 }
 0x128   : > { %659 = vmatmul.msk.f32.gmra.mxu3 %vm290_vm0, %v288_v40  ;;  %643 = vmatmul.msk.f32.gmra.mxu1 %vm290_vm0, %v256_v41 }
 0x12f   : > { %v289_v42 = vpop.trf.xlu0  ;;  %v257_v43 = vpop.trf.xlu1 }
 0x130   : > { %660 = vmatmul.msk.f32.gmra.mxu3 %vm290_vm0, %v289_v42  ;;  %644 = vmatmul.msk.f32.gmra.mxu1 %vm290_vm0, %v257_v43 }
 0x135   : > { %v404_v45 = vpop.f32.mrf.mxu0 }
 0x136   : > { %v405_v46 = vadd.f32 %v819_v44, %v404_v45 }
 0x138   : > { %501 = vst.msk [vmem:[%s824_s6] sm:$0xff] %vm500_vm1, %v405_v46 }
 0x13b   : > { %v452_v47 = vpop.f32.mrf.mxu2 }
 0x13c   : > { %v453_v48 = vadd.f32 %v819_v44, %v452_v47 }
 0x13d   : > { %v407_v49 = vpop.f32.mrf.mxu0 }
 0x13e   : > { %517 = vst.msk [vmem:[%s824_s6 + $0x80] sm:$0xff] %vm500_vm1, %v453_v48  ;;  %v408_v50 = vadd.f32 %v819_v44, %v407_v49 }
 0x140   : > { %502 = vst.msk [vmem:[%s824_s6 + $0x8] sm:$0xff] %vm500_vm1, %v408_v50 }
 0x143   : > { %v455_v51 = vpop.f32.mrf.mxu2 }
 0x144   : > { %v456_v52 = vadd.f32 %v819_v44, %v455_v51 }
 0x145   : > { %v410_v53 = vpop.f32.mrf.mxu0 }
 0x146   : > { %518 = vst.msk [vmem:[%s824_s6 + $0x88] sm:$0xff] %vm500_vm1, %v456_v52  ;;  %v411_v54 = vadd.f32 %v819_v44, %v410_v53 }
 0x148   : > { %503 = vst.msk [vmem:[%s824_s6 + $0x10] sm:$0xff] %vm500_vm1, %v411_v54 }
 0x14b   : > { %v458_v55 = vpop.f32.mrf.mxu2 }
 0x14c   : > { %v459_v56 = vadd.f32 %v819_v44, %v458_v55 }
 0x14d   : > { %v413_v57 = vpop.f32.mrf.mxu0 }
 0x14e   : > { %519 = vst.msk [vmem:[%s824_s6 + $0x90] sm:$0xff] %vm500_vm1, %v459_v56  ;;  %v414_v58 = vadd.f32 %v819_v44, %v413_v57 }
 0x150   : > { %504 = vst.msk [vmem:[%s824_s6 + $0x18] sm:$0xff] %vm500_vm1, %v414_v58 }
 0x153   : > { %v461_v59 = vpop.f32.mrf.mxu2 }
 0x154   : > { %v462_v60 = vadd.f32 %v819_v44, %v461_v59 }
 0x155   : > { %v416_v61 = vpop.f32.mrf.mxu0 }
 0x156   : > { %520 = vst.msk [vmem:[%s824_s6 + $0x98] sm:$0xff] %vm500_vm1, %v462_v60  ;;  %v417_v62 = vadd.f32 %v819_v44, %v416_v61 }
 0x158   : > { %505 = vst.msk [vmem:[%s824_s6 + $0x20] sm:$0xff] %vm500_vm1, %v417_v62 }
 0x15b   : > { %v464_v63 = vpop.f32.mrf.mxu2 }
 0x15c   : > { %v465_v0 = vadd.f32 %v819_v44, %v464_v63 }
 0x15d   : > { %v419_v1 = vpop.f32.mrf.mxu0 }
 0x15e   : > { %521 = vst.msk [vmem:[%s824_s6 + $0xa0] sm:$0xff] %vm500_vm1, %v465_v0  ;;  %v420_v2 = vadd.f32 %v819_v44, %v419_v1 }
 0x160   : > { %506 = vst.msk [vmem:[%s824_s6 + $0x28] sm:$0xff] %vm500_vm1, %v420_v2 }
 0x163   : > { %v467_v3 = vpop.f32.mrf.mxu2 }
 0x164   : > { %v468_v4 = vadd.f32 %v819_v44, %v467_v3 }
 0x165   : > { %v422_v5 = vpop.f32.mrf.mxu0 }
 0x166   : > { %522 = vst.msk [vmem:[%s824_s6 + $0xa8] sm:$0xff] %vm500_vm1, %v468_v4  ;;  %v423_v6 = vadd.f32 %v819_v44, %v422_v5 }
 0x168   : > { %507 = vst.msk [vmem:[%s824_s6 + $0x30] sm:$0xff] %vm500_vm1, %v423_v6 }
 0x16b   : > { %v470_v7 = vpop.f32.mrf.mxu2 }
 0x16c   : > { %v471_v8 = vadd.f32 %v819_v44, %v470_v7 }
 0x16d   : > { %v425_v9 = vpop.f32.mrf.mxu0 }
 0x16e   : > { %523 = vst.msk [vmem:[%s824_s6 + $0xb0] sm:$0xff] %vm500_vm1, %v471_v8  ;;  %v426_v10 = vadd.f32 %v819_v44, %v425_v9 }
 0x170   : > { %508 = vst.msk [vmem:[%s824_s6 + $0x38] sm:$0xff] %vm500_vm1, %v426_v10 }
 0x173   : > { %v473_v11 = vpop.f32.mrf.mxu2 }
 0x174   : > { %v474_v12 = vadd.f32 %v819_v44, %v473_v11 }
 0x175   : > { %v428_v13 = vpop.f32.mrf.mxu1 }
 0x176   : > { %524 = vst.msk [vmem:[%s824_s6 + $0xb8] sm:$0xff] %vm500_vm1, %v474_v12  ;;  %v429_v14 = vadd.f32 %v819_v44, %v428_v13 }
 0x178   : > { %509 = vst.msk [vmem:[%s824_s6 + $0x40] sm:$0xff] %vm500_vm1, %v429_v14 }
 0x17b   : > { %v476_v15 = vpop.f32.mrf.mxu3 }
 0x17c   : > { %v477_v16 = vadd.f32 %v819_v44, %v476_v15 }
 0x17d   : > { %v431_v17 = vpop.f32.mrf.mxu1 }
 0x17e   : > { %525 = vst.msk [vmem:[%s824_s6 + $0xc0] sm:$0xff] %vm500_vm1, %v477_v16  ;;  %v432_v18 = vadd.f32 %v819_v44, %v431_v17 }
 0x180   : > { %510 = vst.msk [vmem:[%s824_s6 + $0x48] sm:$0xff] %vm500_vm1, %v432_v18 }
 0x183   : > { %v479_v19 = vpop.f32.mrf.mxu3 }
 0x184   : > { %v480_v20 = vadd.f32 %v819_v44, %v479_v19 }
 0x185   : > { %v434_v21 = vpop.f32.mrf.mxu1 }
 0x186   : > { %526 = vst.msk [vmem:[%s824_s6 + $0xc8] sm:$0xff] %vm500_vm1, %v480_v20  ;;  %v435_v22 = vadd.f32 %v819_v44, %v434_v21 }
 0x188   : > { %511 = vst.msk [vmem:[%s824_s6 + $0x50] sm:$0xff] %vm500_vm1, %v435_v22 }
 0x18b   : > { %v482_v23 = vpop.f32.mrf.mxu3 }
 0x18c   : > { %v483_v24 = vadd.f32 %v819_v44, %v482_v23 }
 0x18d   : > { %v437_v25 = vpop.f32.mrf.mxu1 }
 0x18e   : > { %527 = vst.msk [vmem:[%s824_s6 + $0xd0] sm:$0xff] %vm500_vm1, %v483_v24  ;;  %v438_v26 = vadd.f32 %v819_v44, %v437_v25 }
 0x190   : > { %512 = vst.msk [vmem:[%s824_s6 + $0x58] sm:$0xff] %vm500_vm1, %v438_v26 }
 0x193   : > { %v485_v27 = vpop.f32.mrf.mxu3 }
 0x194   : > { %v486_v28 = vadd.f32 %v819_v44, %v485_v27 }
 0x195   : > { %v440_v29 = vpop.f32.mrf.mxu1 }
 0x196   : > { %528 = vst.msk [vmem:[%s824_s6 + $0xd8] sm:$0xff] %vm500_vm1, %v486_v28  ;;  %v441_v30 = vadd.f32 %v819_v44, %v440_v29 }
 0x198   : > { %513 = vst.msk [vmem:[%s824_s6 + $0x60] sm:$0xff] %vm500_vm1, %v441_v30 }
 0x19b   : > { %v488_v31 = vpop.f32.mrf.mxu3 }
 0x19c   : > { %v489_v32 = vadd.f32 %v819_v44, %v488_v31 }
 0x19d   : > { %v443_v33 = vpop.f32.mrf.mxu1 }
 0x19e   : > { %529 = vst.msk [vmem:[%s824_s6 + $0xe0] sm:$0xff] %vm500_vm1, %v489_v32  ;;  %v444_v34 = vadd.f32 %v819_v44, %v443_v33 }
 0x1a0   : > { %514 = vst.msk [vmem:[%s824_s6 + $0x68] sm:$0xff] %vm500_vm1, %v444_v34 }
 0x1a3   : > { %v491_v35 = vpop.f32.mrf.mxu3 }
 0x1a4   : > { %v492_v36 = vadd.f32 %v819_v44, %v491_v35 }
 0x1a5   : > { %v446_v37 = vpop.f32.mrf.mxu1 }
 0x1a6   : > { %530 = vst.msk [vmem:[%s824_s6 + $0xe8] sm:$0xff] %vm500_vm1, %v492_v36  ;;  %v447_v38 = vadd.f32 %v819_v44, %v446_v37 }
 0x1a8   : > { %515 = vst.msk [vmem:[%s824_s6 + $0x70] sm:$0xff] %vm500_vm1, %v447_v38 }
 0x1ab   : > { %v494_v39 = vpop.f32.mrf.mxu3 }
 0x1ac   : > { %v495_v40 = vadd.f32 %v819_v44, %v494_v39 }
 0x1ad   : > { %v449_v41 = vpop.f32.mrf.mxu1 }
 0x1ae   : > { %531 = vst.msk [vmem:[%s824_s6 + $0xf0] sm:$0xff] %vm500_vm1, %v495_v40  ;;  %v450_v42 = vadd.f32 %v819_v44, %v449_v41 }
 0x1b0   : > { %516 = vst.msk [vmem:[%s824_s6 + $0x78] sm:$0xff] %vm500_vm1, %v450_v42 }
 0x1b3   : > { %v497_v43 = vpop.f32.mrf.mxu3 }
 0x1b4   : > { %v498_v45 = vadd.f32 %v819_v44, %v497_v43 }
 0x1b6   : > { %532 = vst.msk [vmem:[%s824_s6 + $0xf8] sm:$0xff] %vm500_vm1, %v498_v45 }
 0x1b7 PF: > { %s13_s14 = sadd.s32 1, %s725_s14   ;;  %s935_s12 = smov %s721_s13 }
 0x1b8   : > { %p10_p5 = scmp.ge.s32.totalorder %s13_s14, 4   ;;  %s936_s13 = smov %s938_s15 }
 0x1ba   :  { %12 = sbr.rel (!%p10_p5) target bundleno = 2 (0x2), region = 62 }

</bundles_post_ra>
